<compile_context>
chip_gen: v6e
topology: v6e:2x2x1
jax: 0.10.0
libtpu: 0.0.40
codegen_flags: <defaults>
</compile_context>

<pallas_src>
import functools

import numpy as np
import jax
import jax.numpy as jnp
from jax import lax
from jax.experimental import pallas as pl
from jax.experimental.pallas import tpu as pltpu


# ----------------------------------------------------------------------------
# 3D sin-cos positional embedding (verbatim NumPy port of the PyTorch helpers;
# constant buffer computed once at init, not per-forward compute).
# ----------------------------------------------------------------------------
def get_1d_sincos_pos_embed_from_grid(embed_dim, pos):
    assert embed_dim % 2 == 0
    omega = np.arange(embed_dim // 2, dtype=float)
    omega /= embed_dim / 2.0
    omega = 1.0 / 10000 ** omega
    pos = pos.reshape(-1)
    out = np.einsum("m,d->md", pos, omega)
    emb_sin = np.sin(out)
    emb_cos = np.cos(out)
    return np.concatenate([emb_sin, emb_cos], axis=1)


def get_3d_sincos_pos_embed_from_grid(embed_dim, grid):
    assert embed_dim % 3 == 0
    emb_d = get_1d_sincos_pos_embed_from_grid(embed_dim // 3, grid[0])
    emb_h = get_1d_sincos_pos_embed_from_grid(embed_dim // 3, grid[1])
    emb_w = get_1d_sincos_pos_embed_from_grid(embed_dim // 3, grid[2])
    return np.concatenate([emb_d, emb_h, emb_w], axis=1)


def get_3d_sincos_pos_embed(embed_dim, grid_size):
    grid_size = (grid_size,) * 3 if not isinstance(grid_size, tuple) else grid_size
    grid_d = np.arange(grid_size[0], dtype=np.float32)
    grid_h = np.arange(grid_size[1], dtype=np.float32)
    grid_w = np.arange(grid_size[2], dtype=np.float32)
    grid = np.meshgrid(grid_w, grid_h, grid_d)
    grid = np.stack(grid, axis=0)
    grid = grid.reshape([3, 1, grid_size[0], grid_size[1], grid_size[2]])
    return get_3d_sincos_pos_embed_from_grid(embed_dim, grid)


# ----------------------------------------------------------------------------
# In-kernel helpers.
# ----------------------------------------------------------------------------
def _layernorm(x, w, b, eps=1e-5):
    mean = jnp.mean(x, axis=-1, keepdims=True)
    xc = x - mean
    var = jnp.mean(xc * xc, axis=-1, keepdims=True)
    return xc * lax.rsqrt(var + eps) * w + b


def _mxu(a, b):
    """bf16 MXU matmul with f32 accumulation."""
    return jnp.dot(a.astype(jnp.bfloat16), b.astype(jnp.bfloat16),
                   preferred_element_type=jnp.float32)


def _mxu_nt(a, b):
    """a:(n,d), b:(m,d) -> (n,m); contraction on last dims (q @ k^T without transpose)."""
    return lax.dot_general(a.astype(jnp.bfloat16), b.astype(jnp.bfloat16),
                           (((1,), (1,)), ((), ())),
                           preferred_element_type=jnp.float32)


# ----------------------------------------------------------------------------
# Fused kernel: one grid step = (one batch element, one transformer layer).
# ----------------------------------------------------------------------------
def _vit_decoder_kernel(token_ref, pos_ref,
                        ln1w_ref, ln1b_ref, wqkv_ref, wo_ref, ob_ref,
                        ln2w_ref, ln2b_ref, w1_ref, b1_ref, w2_ref, b2_ref,
                        lnfw_ref, lnfb_ref, voxw_ref, voxb_ref,
                        o_ref, x_ref, *, heads, dim_head):
    l = pl.program_id(1)
    inner = heads * dim_head

    @pl.when(l == 0)
    def _():
        x_ref[...] = token_ref[0] + pos_ref[...]          # (N, dim) f32 residual carry

    x = x_ref[...]

    # ---- PreNorm + multi-head self-attention + residual ----
    h = _layernorm(x, ln1w_ref[0], ln1b_ref[0]).astype(jnp.bfloat16)
    qkv = _mxu(h, wqkv_ref[0])                            # (N, 3*inner); Wq pre-scaled
    head_outs = []
    for hh in range(heads):                               # static unroll over heads
        q = qkv[:, hh * dim_head:(hh + 1) * dim_head]
        k = qkv[:, inner + hh * dim_head: inner + (hh + 1) * dim_head]
        v = qkv[:, 2 * inner + hh * dim_head: 2 * inner + (hh + 1) * dim_head]
        s = _mxu_nt(q, k)                                 # (N, N) f32 (scale folded in)
        s = s - jnp.max(s, axis=-1, keepdims=True)
        e = jnp.exp(s)
        p = e * pl.reciprocal(jnp.sum(e, axis=-1, keepdims=True), approx=True)
        head_outs.append(_mxu(p, v))                      # (N, dim_head)
    o_cat = jnp.concatenate(head_outs, axis=-1)           # (N, inner) == concat of heads
    x = x + _mxu(o_cat, wo_ref[0]) + ob_ref[0]            # single full-depth out-proj

    # ---- PreNorm + FeedForward (Linear -> Tanh -> Linear) + residual ----
    hf = _layernorm(x, ln2w_ref[0], ln2b_ref[0])
    h1 = jnp.tanh(_mxu(hf, w1_ref[0]) + b1_ref[0])
    x = x + _mxu(h1, w2_ref[0]) + b2_ref[0]
    x_ref[...] = x

    # ---- final LayerNorm + to_voxel (ConvTranspose3d, kernel==stride) as a GEMM ----
    @pl.when(l == pl.num_programs(1) - 1)
    def _():
        xf = _layernorm(x, lnfw_ref[...], lnfb_ref[...])
        o_ref[0] = (_mxu(xf, voxw_ref[...]) + voxb_ref[...]).astype(o_ref.dtype)


_MATMUL_WEIGHTS = ("wqkv", "wo", "w1", "w2", "voxw")      # cast to bf16 at the boundary
_LAYER_PARAMS = ("ln1w", "ln1b", "wqkv", "wo", "ob",
                 "ln2w", "ln2b", "w1", "b1", "w2", "b2")  # streamed per layer
_CONST_PARAMS = ("lnfw", "lnfb", "voxw", "voxb")          # resident (constant index)


def vit_decoder3d_forward(token, params, *, grid_size, patch_size, channels,
                          depth, heads, dim_head):
    B, N, dim = token.shape
    pd, ph, pw = patch_size
    P = channels * pd * ph * pw

    def arg(name):
        v = params[name]
        return v.astype(jnp.bfloat16) if name in _MATMUL_WEIGHTS else v

    def layer_spec(name):
        shp = tuple(params[name].shape)                   # (depth, ...)
        blk = (1,) + shp[1:]
        nd = len(shp)
        return pl.BlockSpec(blk, lambda b, l, _nd=nd: (l,) + (0,) * (_nd - 1))

    def const_spec(name):
        shp = tuple(params[name].shape)
        nd = len(shp)
        return pl.BlockSpec(shp, lambda b, l, _nd=nd: (0,) * _nd)

    in_specs = ([pl.BlockSpec((1, N, dim), lambda b, l: (b, 0, 0)),   # token
                 const_spec("pos")]
                + [layer_spec(n) for n in _LAYER_PARAMS]
                + [const_spec(n) for n in _CONST_PARAMS])

    order = ("pos",) + _LAYER_PARAMS + _CONST_PARAMS
    kernel = functools.partial(_vit_decoder_kernel, heads=heads, dim_head=dim_head)

    out = pl.pallas_call(
        kernel,
        out_shape=jax.ShapeDtypeStruct((B, N, P), jnp.float32),
        grid_spec=pltpu.PrefetchScalarGridSpec(
            num_scalar_prefetch=0,
            grid=(B, depth),                              # depth streamed, innermost
            in_specs=in_specs,
            out_specs=pl.BlockSpec((1, N, P), lambda b, l: (b, 0, 0)),
            scratch_shapes=[pltpu.VMEM((N, dim), jnp.float32)],  # residual carry
        ),
        compiler_params=pltpu.CompilerParams(
            dimension_semantics=("parallel", "arbitrary"),
            # explicit scoped-VMEM budget (defaults are 16/32 MiB, not physical);
            # 48 MiB fits v5e/v6e (128 MiB) and v7x (64 MiB).
            vmem_limit_bytes=48 * 1024 * 1024),
    )(token, *[arg(n) for n in order])

    # Un-patchify: (B, N, C*pd*ph*pw) -> (B, C, D, H, W).  Cheap XLA layout plumbing.
    gd, gh, gw = grid_size
    out = out.reshape(B, gd, gh, gw, channels, pd, ph, pw)
    out = out.transpose(0, 4, 1, 5, 2, 6, 3, 7)
    return out.reshape(B, channels, gd * pd, gh * ph, gw * pw)


# ----------------------------------------------------------------------------
# Deterministic synthetic parameters (f32 masters) in kernel-friendly layout.
# ----------------------------------------------------------------------------
def init_params(key, *, dim, depth, heads, dim_head, mlp_dim, channels,
                grid_size, patch_size):
    # TODO(synk): the PyTorch module applies xavier_uniform_ via init_weights(); here we
    # use deterministic scaled-normal weights (biases 0, LayerNorm weight 1 / bias 0).
    inner = heads * dim_head
    pd, ph, pw = patch_size
    P = channels * pd * ph * pw
    ks = iter(jax.random.split(key, 8))

    def w(shape, fan_in):
        return jax.random.normal(next(ks), shape, jnp.float32) * (1.0 / np.sqrt(fan_in))

    # Fused to_qkv weight (dim, 3*inner), column order [Q(head-major) | K | V];
    # the attention scale dim_head**-0.5 is folded into the Q columns.
    wqkv = w((depth, dim, 3 * inner), dim)
    scale_cols = jnp.concatenate(
        [jnp.full((inner,), dim_head ** -0.5, jnp.float32),
         jnp.ones((2 * inner,), jnp.float32)])
    wqkv = wqkv * scale_cols

    return {
        "pos":  jnp.asarray(get_3d_sincos_pos_embed(dim, grid_size), jnp.float32),
        "ln1w": jnp.ones((depth, 1, dim), jnp.float32),
        "ln1b": jnp.zeros((depth, 1, dim), jnp.float32),
        "wqkv": wqkv,
        # to_out weight pre-transposed for x @ W: (inner, dim)
        "wo":   w((depth, inner, dim), inner),
        "ob":   jnp.zeros((depth, 1, dim), jnp.float32),
        "ln2w": jnp.ones((depth, 1, dim), jnp.float32),
        "ln2b": jnp.zeros((depth, 1, dim), jnp.float32),
        "w1":   w((depth, dim, mlp_dim), dim),
        "b1":   jnp.zeros((depth, 1, mlp_dim), jnp.float32),
        "w2":   w((depth, mlp_dim, dim), mlp_dim),
        "b2":   jnp.zeros((depth, 1, dim), jnp.float32),
        "lnfw": jnp.ones((1, dim), jnp.float32),
        "lnfb": jnp.zeros((1, dim), jnp.float32),
        # ConvTranspose3d(dim, channels, k=patch, stride=patch) == per-token GEMM with
        # weight (dim, channels, pd, ph, pw) flattened to (dim, channels*pd*ph*pw)
        "voxw": w((dim, P), dim),
        # bias[c] replicated across the pd*ph*pw voxels of each output channel (zeros)
        "voxb": jnp.zeros((1, P), jnp.float32),
    }


if __name__ == "__main__":
    key = jax.random.PRNGKey(0)
    kp, kt = jax.random.split(key)

    # Small shapes: 16^3 volume, 8^3 patches -> 2x2x2 = 8 tokens; dim=48 (divisible by 6
    # as the 3D sincos pos-embed requires), depth=2, 4 heads x 16, mlp 96, 1 channel.
    volume_size = (16, 16, 16)
    patch_size = (8, 8, 8)
    dim, depth, heads, dim_head, mlp_dim, channels = 48, 2, 4, 16, 96, 1
    grid_size = tuple(v // p for v, p in zip(volume_size, patch_size))
    num_patches = grid_size[0] * grid_size[1] * grid_size[2]

    params = init_params(kp, dim=dim, depth=depth, heads=heads, dim_head=dim_head,
                         mlp_dim=mlp_dim, channels=channels,
                         grid_size=grid_size, patch_size=patch_size)
    token = jax.random.normal(kt, (2, num_patches, dim), jnp.float32)

    fwd = jax.jit(functools.partial(vit_decoder3d_forward,
                                    grid_size=grid_size, patch_size=patch_size,
                                    channels=channels, depth=depth,
                                    heads=heads, dim_head=dim_head))
    out = fwd(token, params)
    jax.block_until_ready(out)
    assert out.shape == (2, channels, 16, 16, 16)
    assert bool(jnp.all(jnp.isfinite(out)))
    print("KERNEL_OK")
</pallas_src>

<mosaic_0001>
module attributes {stable_mosaic.version = 11 : i64} {
  func.func @_vit_decoder_kernel(%arg0: i32, %arg1: i32, %arg2: memref<1x8x48xf32, #tpu.memory_space<vmem>>, %arg3: memref<8x48xf32, #tpu.memory_space<vmem>>, %arg4: memref<1x1x48xf32, #tpu.memory_space<vmem>>, %arg5: memref<1x1x48xf32, #tpu.memory_space<vmem>>, %arg6: memref<1x48x192xbf16, #tpu.memory_space<vmem>>, %arg7: memref<1x64x48xbf16, #tpu.memory_space<vmem>>, %arg8: memref<1x1x48xf32, #tpu.memory_space<vmem>>, %arg9: memref<1x1x48xf32, #tpu.memory_space<vmem>>, %arg10: memref<1x1x48xf32, #tpu.memory_space<vmem>>, %arg11: memref<1x48x96xbf16, #tpu.memory_space<vmem>>, %arg12: memref<1x1x96xf32, #tpu.memory_space<vmem>>, %arg13: memref<1x96x48xbf16, #tpu.memory_space<vmem>>, %arg14: memref<1x1x48xf32, #tpu.memory_space<vmem>>, %arg15: memref<1x48xf32, #tpu.memory_space<vmem>>, %arg16: memref<1x48xf32, #tpu.memory_space<vmem>>, %arg17: memref<48x512xbf16, #tpu.memory_space<vmem>>, %arg18: memref<1x512xf32, #tpu.memory_space<vmem>>, %arg19: memref<1x8x512xf32, #tpu.memory_space<vmem>>, %arg20: memref<8x48xf32, #tpu.memory_space<vmem>>) attributes {dimension_semantics = [#tpu.dimension_semantics<parallel>, #tpu.dimension_semantics<arbitrary>], iteration_bounds = array<i64: 2, 2>, scalar_prefetch = 0 : i64, scratch_operands = 1 : i64, tpu.core_type = #tpu.core_type<tc>, window_params = [{transform_indices = @transform_0, window_bounds = array<i64: 1, 8, 48>}, {pipeline_mode = #tpu.pipeline_mode<synchronous>, transform_indices = @transform_1, window_bounds = array<i64: 8, 48>}, {transform_indices = @transform_2, window_bounds = array<i64: 1, 1, 48>}, {transform_indices = @transform_3, window_bounds = array<i64: 1, 1, 48>}, {transform_indices = @transform_4, window_bounds = array<i64: 1, 48, 192>}, {transform_indices = @transform_5, window_bounds = array<i64: 1, 64, 48>}, {transform_indices = @transform_6, window_bounds = array<i64: 1, 1, 48>}, {transform_indices = @transform_7, window_bounds = array<i64: 1, 1, 48>}, {transform_indices = @transform_8, window_bounds = array<i64: 1, 1, 48>}, {transform_indices = @transform_9, window_bounds = array<i64: 1, 48, 96>}, {transform_indices = @transform_10, window_bounds = array<i64: 1, 1, 96>}, {transform_indices = @transform_11, window_bounds = array<i64: 1, 96, 48>}, {transform_indices = @transform_12, window_bounds = array<i64: 1, 1, 48>}, {pipeline_mode = #tpu.pipeline_mode<synchronous>, transform_indices = @transform_13, window_bounds = array<i64: 1, 48>}, {pipeline_mode = #tpu.pipeline_mode<synchronous>, transform_indices = @transform_14, window_bounds = array<i64: 1, 48>}, {pipeline_mode = #tpu.pipeline_mode<synchronous>, transform_indices = @transform_15, window_bounds = array<i64: 48, 512>}, {pipeline_mode = #tpu.pipeline_mode<synchronous>, transform_indices = @transform_16, window_bounds = array<i64: 1, 512>}, {transform_indices = @transform_17, window_bounds = array<i64: 1, 8, 512>}]} {
    %c0_i32 = arith.constant 0 : i32
    %0 = arith.cmpi eq, %arg1, %c0_i32 : i32
    %1 = arith.extui %0 : i1 to i32
    %c0_i32_0 = arith.constant 0 : i32
    %2 = arith.cmpi ne, %1, %c0_i32_0 : i32
    scf.if %2 {
      %c0_67 = arith.constant 0 : index
      %c0_68 = arith.constant 0 : index
      %c0_69 = arith.constant 0 : index
      %164 = vector.load %arg2[%c0_67, %c0_68, %c0_69] : memref<1x8x48xf32, #tpu.memory_space<vmem>>, vector<1x8x48xf32>
      %165 = vector.shape_cast %164 : vector<1x8x48xf32> to vector<8x48xf32>
      %c0_70 = arith.constant 0 : index
      %c0_71 = arith.constant 0 : index
      %166 = vector.load %arg3[%c0_70, %c0_71] : memref<8x48xf32, #tpu.memory_space<vmem>>, vector<8x48xf32>
      %167 = arith.addf %165, %166 : vector<8x48xf32>
      %c0_72 = arith.constant 0 : index
      %c0_73 = arith.constant 0 : index
      %168 = vector.load %arg20[%c0_72, %c0_73] : memref<8x48xf32, #tpu.memory_space<vmem>>, vector<8x48xf32>
      tpu.vector_store %arg20[%c0_72, %c0_73], %167 {strides = array<i32>} : memref<8x48xf32, #tpu.memory_space<vmem>>, vector<8x48xf32>,
    } else {
    }
    %c0 = arith.constant 0 : index
    %c0_1 = arith.constant 0 : index
    %3 = vector.load %arg20[%c0, %c0_1] : memref<8x48xf32, #tpu.memory_space<vmem>>, vector<8x48xf32>
    %c0_2 = arith.constant 0 : index
    %c0_3 = arith.constant 0 : index
    %c0_4 = arith.constant 0 : index
    %4 = vector.load %arg4[%c0_2, %c0_3, %c0_4] : memref<1x1x48xf32, #tpu.memory_space<vmem>>, vector<1x1x48xf32>
    %5 = vector.shape_cast %4 : vector<1x1x48xf32> to vector<1x48xf32>
    %c0_5 = arith.constant 0 : index
    %c0_6 = arith.constant 0 : index
    %c0_7 = arith.constant 0 : index
    %6 = vector.load %arg5[%c0_5, %c0_6, %c0_7] : memref<1x1x48xf32, #tpu.memory_space<vmem>>, vector<1x1x48xf32>
    %7 = vector.shape_cast %6 : vector<1x1x48xf32> to vector<1x48xf32>
    %cst = arith.constant dense<0.000000e+00> : vector<8xf32>
    %8 = vector.multi_reduction <add>, %3, %cst [1] : vector<8x48xf32> to vector<8xf32>
    %9 = vector.shape_cast %8 : vector<8xf32> to vector<8x1xf32>
    %cst_8 = arith.constant 4.800000e+01 : f32
    %10 = vector.broadcast %cst_8 : f32 to vector<8x1xf32>
    %11 = arith.divf %9, %10 : vector<8x1xf32>
    %12 = vector.broadcast %11 : vector<8x1xf32> to vector<8x48xf32>
    %13 = arith.subf %3, %12 : vector<8x48xf32>
    %14 = arith.mulf %13, %13 : vector<8x48xf32>
    %cst_9 = arith.constant dense<0.000000e+00> : vector<8xf32>
    %15 = vector.multi_reduction <add>, %14, %cst_9 [1] : vector<8x48xf32> to vector<8xf32>
    %16 = vector.shape_cast %15 : vector<8xf32> to vector<8x1xf32>
    %cst_10 = arith.constant 4.800000e+01 : f32
    %17 = vector.broadcast %cst_10 : f32 to vector<8x1xf32>
    %18 = arith.divf %16, %17 : vector<8x1xf32>
    %cst_11 = arith.constant 9.99999974E-6 : f32
    %19 = vector.broadcast %cst_11 : f32 to vector<8x1xf32>
    %20 = arith.addf %18, %19 : vector<8x1xf32>
    %21 = math.rsqrt %20 : vector<8x1xf32>
    %22 = vector.broadcast %21 : vector<8x1xf32> to vector<8x48xf32>
    %23 = arith.mulf %13, %22 : vector<8x48xf32>
    %24 = vector.broadcast %5 : vector<1x48xf32> to vector<8x48xf32>
    %25 = arith.mulf %23, %24 : vector<8x48xf32>
    %26 = vector.broadcast %7 : vector<1x48xf32> to vector<8x48xf32>
    %27 = arith.addf %25, %26 : vector<8x48xf32>
    %28 = arith.truncf %27 : vector<8x48xf32> to vector<8x48xbf16>
    %c0_12 = arith.constant 0 : index
    %c0_13 = arith.constant 0 : index
    %c0_14 = arith.constant 0 : index
    %29 = vector.load %arg6[%c0_12, %c0_13, %c0_14] : memref<1x48x192xbf16, #tpu.memory_space<vmem>>, vector<1x48x192xbf16>
    %30 = vector.shape_cast %29 : vector<1x48x192xbf16> to vector<48x192xbf16>
    %cst_15 = arith.constant dense<0.000000e+00> : vector<8x192xf32>
    %31 = tpu.matmul %28, %30, %cst_15 {dimension_numbers = #tpu.dot_dimension_numbers<[1], [0], [0], [1], [0, 0, 1, 1], [], []>} : vector<8x48xbf16>, vector<48x192xbf16>, vector<8x192xf32> -> vector<8x192xf32>
    %32 = vector.extract_strided_slice %31 {offsets = [0, 0], sizes = [8, 16], strides = [1, 1]} : vector<8x192xf32> to vector<8x16xf32>
    %33 = vector.extract_strided_slice %31 {offsets = [0, 64], sizes = [8, 16], strides = [1, 1]} : vector<8x192xf32> to vector<8x16xf32>
    %34 = vector.extract_strided_slice %31 {offsets = [0, 128], sizes = [8, 16], strides = [1, 1]} : vector<8x192xf32> to vector<8x16xf32>
    %35 = arith.truncf %32 : vector<8x16xf32> to vector<8x16xbf16>
    %36 = arith.truncf %33 : vector<8x16xf32> to vector<8x16xbf16>
    %cst_16 = arith.constant dense<0.000000e+00> : vector<8x8xf32>
    %37 = tpu.matmul %35, %36, %cst_16 {dimension_numbers = #tpu.dot_dimension_numbers<[1], [1], [0], [0], [0, 0, 1, 0], [], []>} : vector<8x16xbf16>, vector<8x16xbf16>, vector<8x8xf32> -> vector<8x8xf32>
    %cst_17 = arith.constant dense<0xFF800000> : vector<8xf32>
    %38 = vector.multi_reduction <maximumf>, %37, %cst_17 [1] : vector<8x8xf32> to vector<8xf32>
    %39 = vector.shape_cast %38 : vector<8xf32> to vector<8x1xf32>
    %40 = vector.broadcast %39 : vector<8x1xf32> to vector<8x8xf32>
    %41 = arith.subf %37, %40 : vector<8x8xf32>
    %42 = math.exp %41 : vector<8x8xf32>
    %cst_18 = arith.constant dense<0.000000e+00> : vector<8xf32>
    %43 = vector.multi_reduction <add>, %42, %cst_18 [1] : vector<8x8xf32> to vector<8xf32>
    %44 = vector.shape_cast %43 : vector<8xf32> to vector<8x1xf32>
    %45 = tpu.reciprocal %44 {approx = true} : vector<8x1xf32> -> vector<8x1xf32>
    %46 = vector.broadcast %45 : vector<8x1xf32> to vector<8x8xf32>
    %47 = arith.mulf %42, %46 : vector<8x8xf32>
    %48 = arith.truncf %47 : vector<8x8xf32> to vector<8x8xbf16>
    %49 = arith.truncf %34 : vector<8x16xf32> to vector<8x16xbf16>
    %cst_19 = arith.constant dense<0.000000e+00> : vector<8x16xf32>
    %50 = tpu.matmul %48, %49, %cst_19 {dimension_numbers = #tpu.dot_dimension_numbers<[1], [0], [0], [1], [0, 0, 1, 1], [], []>} : vector<8x8xbf16>, vector<8x16xbf16>, vector<8x16xf32> -> vector<8x16xf32>
    %51 = vector.extract_strided_slice %31 {offsets = [0, 16], sizes = [8, 16], strides = [1, 1]} : vector<8x192xf32> to vector<8x16xf32>
    %52 = vector.extract_strided_slice %31 {offsets = [0, 80], sizes = [8, 16], strides = [1, 1]} : vector<8x192xf32> to vector<8x16xf32>
    %53 = vector.extract_strided_slice %31 {offsets = [0, 144], sizes = [8, 16], strides = [1, 1]} : vector<8x192xf32> to vector<8x16xf32>
    %54 = arith.truncf %51 : vector<8x16xf32> to vector<8x16xbf16>
    %55 = arith.truncf %52 : vector<8x16xf32> to vector<8x16xbf16>
    %cst_20 = arith.constant dense<0.000000e+00> : vector<8x8xf32>
    %56 = tpu.matmul %54, %55, %cst_20 {dimension_numbers = #tpu.dot_dimension_numbers<[1], [1], [0], [0], [0, 0, 1, 0], [], []>} : vector<8x16xbf16>, vector<8x16xbf16>, vector<8x8xf32> -> vector<8x8xf32>
    %cst_21 = arith.constant dense<0xFF800000> : vector<8xf32>
    %57 = vector.multi_reduction <maximumf>, %56, %cst_21 [1] : vector<8x8xf32> to vector<8xf32>
    %58 = vector.shape_cast %57 : vector<8xf32> to vector<8x1xf32>
    %59 = vector.broadcast %58 : vector<8x1xf32> to vector<8x8xf32>
    %60 = arith.subf %56, %59 : vector<8x8xf32>
    %61 = math.exp %60 : vector<8x8xf32>
    %cst_22 = arith.constant dense<0.000000e+00> : vector<8xf32>
    %62 = vector.multi_reduction <add>, %61, %cst_22 [1] : vector<8x8xf32> to vector<8xf32>
    %63 = vector.shape_cast %62 : vector<8xf32> to vector<8x1xf32>
    %64 = tpu.reciprocal %63 {approx = true} : vector<8x1xf32> -> vector<8x1xf32>
    %65 = vector.broadcast %64 : vector<8x1xf32> to vector<8x8xf32>
    %66 = arith.mulf %61, %65 : vector<8x8xf32>
    %67 = arith.truncf %66 : vector<8x8xf32> to vector<8x8xbf16>
    %68 = arith.truncf %53 : vector<8x16xf32> to vector<8x16xbf16>
    %cst_23 = arith.constant dense<0.000000e+00> : vector<8x16xf32>
    %69 = tpu.matmul %67, %68, %cst_23 {dimension_numbers = #tpu.dot_dimension_numbers<[1], [0], [0], [1], [0, 0, 1, 1], [], []>} : vector<8x8xbf16>, vector<8x16xbf16>, vector<8x16xf32> -> vector<8x16xf32>
    %70 = vector.extract_strided_slice %31 {offsets = [0, 32], sizes = [8, 16], strides = [1, 1]} : vector<8x192xf32> to vector<8x16xf32>
    %71 = vector.extract_strided_slice %31 {offsets = [0, 96], sizes = [8, 16], strides = [1, 1]} : vector<8x192xf32> to vector<8x16xf32>
    %72 = vector.extract_strided_slice %31 {offsets = [0, 160], sizes = [8, 16], strides = [1, 1]} : vector<8x192xf32> to vector<8x16xf32>
    %73 = arith.truncf %70 : vector<8x16xf32> to vector<8x16xbf16>
    %74 = arith.truncf %71 : vector<8x16xf32> to vector<8x16xbf16>
    %cst_24 = arith.constant dense<0.000000e+00> : vector<8x8xf32>
    %75 = tpu.matmul %73, %74, %cst_24 {dimension_numbers = #tpu.dot_dimension_numbers<[1], [1], [0], [0], [0, 0, 1, 0], [], []>} : vector<8x16xbf16>, vector<8x16xbf16>, vector<8x8xf32> -> vector<8x8xf32>
    %cst_25 = arith.constant dense<0xFF800000> : vector<8xf32>
    %76 = vector.multi_reduction <maximumf>, %75, %cst_25 [1] : vector<8x8xf32> to vector<8xf32>
    %77 = vector.shape_cast %76 : vector<8xf32> to vector<8x1xf32>
    %78 = vector.broadcast %77 : vector<8x1xf32> to vector<8x8xf32>
    %79 = arith.subf %75, %78 : vector<8x8xf32>
    %80 = math.exp %79 : vector<8x8xf32>
    %cst_26 = arith.constant dense<0.000000e+00> : vector<8xf32>
    %81 = vector.multi_reduction <add>, %80, %cst_26 [1] : vector<8x8xf32> to vector<8xf32>
    %82 = vector.shape_cast %81 : vector<8xf32> to vector<8x1xf32>
    %83 = tpu.reciprocal %82 {approx = true} : vector<8x1xf32> -> vector<8x1xf32>
    %84 = vector.broadcast %83 : vector<8x1xf32> to vector<8x8xf32>
    %85 = arith.mulf %80, %84 : vector<8x8xf32>
    %86 = arith.truncf %85 : vector<8x8xf32> to vector<8x8xbf16>
    %87 = arith.truncf %72 : vector<8x16xf32> to vector<8x16xbf16>
    %cst_27 = arith.constant dense<0.000000e+00> : vector<8x16xf32>
    %88 = tpu.matmul %86, %87, %cst_27 {dimension_numbers = #tpu.dot_dimension_numbers<[1], [0], [0], [1], [0, 0, 1, 1], [], []>} : vector<8x8xbf16>, vector<8x16xbf16>, vector<8x16xf32> -> vector<8x16xf32>
    %89 = vector.extract_strided_slice %31 {offsets = [0, 48], sizes = [8, 16], strides = [1, 1]} : vector<8x192xf32> to vector<8x16xf32>
    %90 = vector.extract_strided_slice %31 {offsets = [0, 112], sizes = [8, 16], strides = [1, 1]} : vector<8x192xf32> to vector<8x16xf32>
    %91 = vector.extract_strided_slice %31 {offsets = [0, 176], sizes = [8, 16], strides = [1, 1]} : vector<8x192xf32> to vector<8x16xf32>
    %92 = arith.truncf %89 : vector<8x16xf32> to vector<8x16xbf16>
    %93 = arith.truncf %90 : vector<8x16xf32> to vector<8x16xbf16>
    %cst_28 = arith.constant dense<0.000000e+00> : vector<8x8xf32>
    %94 = tpu.matmul %92, %93, %cst_28 {dimension_numbers = #tpu.dot_dimension_numbers<[1], [1], [0], [0], [0, 0, 1, 0], [], []>} : vector<8x16xbf16>, vector<8x16xbf16>, vector<8x8xf32> -> vector<8x8xf32>
    %cst_29 = arith.constant dense<0xFF800000> : vector<8xf32>
    %95 = vector.multi_reduction <maximumf>, %94, %cst_29 [1] : vector<8x8xf32> to vector<8xf32>
    %96 = vector.shape_cast %95 : vector<8xf32> to vector<8x1xf32>
    %97 = vector.broadcast %96 : vector<8x1xf32> to vector<8x8xf32>
    %98 = arith.subf %94, %97 : vector<8x8xf32>
    %99 = math.exp %98 : vector<8x8xf32>
    %cst_30 = arith.constant dense<0.000000e+00> : vector<8xf32>
    %100 = vector.multi_reduction <add>, %99, %cst_30 [1] : vector<8x8xf32> to vector<8xf32>
    %101 = vector.shape_cast %100 : vector<8xf32> to vector<8x1xf32>
    %102 = tpu.reciprocal %101 {approx = true} : vector<8x1xf32> -> vector<8x1xf32>
    %103 = vector.broadcast %102 : vector<8x1xf32> to vector<8x8xf32>
    %104 = arith.mulf %99, %103 : vector<8x8xf32>
    %105 = arith.truncf %104 : vector<8x8xf32> to vector<8x8xbf16>
    %106 = arith.truncf %91 : vector<8x16xf32> to vector<8x16xbf16>
    %cst_31 = arith.constant dense<0.000000e+00> : vector<8x16xf32>
    %107 = tpu.matmul %105, %106, %cst_31 {dimension_numbers = #tpu.dot_dimension_numbers<[1], [0], [0], [1], [0, 0, 1, 1], [], []>} : vector<8x8xbf16>, vector<8x16xbf16>, vector<8x16xf32> -> vector<8x16xf32>
    %108 = tpu.concatenate %50, %69, %88, %107 in 1 : vector<8x16xf32>, vector<8x16xf32>, vector<8x16xf32>, vector<8x16xf32> -> vector<8x64xf32>
    %c0_32 = arith.constant 0 : index
    %c0_33 = arith.constant 0 : index
    %c0_34 = arith.constant 0 : index
    %109 = vector.load %arg7[%c0_32, %c0_33, %c0_34] : memref<1x64x48xbf16, #tpu.memory_space<vmem>>, vector<1x64x48xbf16>
    %110 = vector.shape_cast %109 : vector<1x64x48xbf16> to vector<64x48xbf16>
    %111 = arith.truncf %108 : vector<8x64xf32> to vector<8x64xbf16>
    %cst_35 = arith.constant dense<0.000000e+00> : vector<8x48xf32>
    %112 = tpu.matmul %111, %110, %cst_35 {dimension_numbers = #tpu.dot_dimension_numbers<[1], [0], [0], [1], [0, 0, 1, 1], [], []>} : vector<8x64xbf16>, vector<64x48xbf16>, vector<8x48xf32> -> vector<8x48xf32>
    %113 = arith.addf %3, %112 : vector<8x48xf32>
    %c0_36 = arith.constant 0 : index
    %c0_37 = arith.constant 0 : index
    %c0_38 = arith.constant 0 : index
    %114 = vector.load %arg8[%c0_36, %c0_37, %c0_38] : memref<1x1x48xf32, #tpu.memory_space<vmem>>, vector<1x1x48xf32>
    %115 = vector.shape_cast %114 : vector<1x1x48xf32> to vector<1x48xf32>
    %116 = vector.broadcast %115 : vector<1x48xf32> to vector<8x48xf32>
    %117 = arith.addf %113, %116 : vector<8x48xf32>
    %c0_39 = arith.constant 0 : index
    %c0_40 = arith.constant 0 : index
    %c0_41 = arith.constant 0 : index
    %118 = vector.load %arg9[%c0_39, %c0_40, %c0_41] : memref<1x1x48xf32, #tpu.memory_space<vmem>>, vector<1x1x48xf32>
    %119 = vector.shape_cast %118 : vector<1x1x48xf32> to vector<1x48xf32>
    %c0_42 = arith.constant 0 : index
    %c0_43 = arith.constant 0 : index
    %c0_44 = arith.constant 0 : index
    %120 = vector.load %arg10[%c0_42, %c0_43, %c0_44] : memref<1x1x48xf32, #tpu.memory_space<vmem>>, vector<1x1x48xf32>
    %121 = vector.shape_cast %120 : vector<1x1x48xf32> to vector<1x48xf32>
    %cst_45 = arith.constant dense<0.000000e+00> : vector<8xf32>
    %122 = vector.multi_reduction <add>, %117, %cst_45 [1] : vector<8x48xf32> to vector<8xf32>
    %123 = vector.shape_cast %122 : vector<8xf32> to vector<8x1xf32>
    %cst_46 = arith.constant 4.800000e+01 : f32
    %124 = vector.broadcast %cst_46 : f32 to vector<8x1xf32>
    %125 = arith.divf %123, %124 : vector<8x1xf32>
    %126 = vector.broadcast %125 : vector<8x1xf32> to vector<8x48xf32>
    %127 = arith.subf %117, %126 : vector<8x48xf32>
    %128 = arith.mulf %127, %127 : vector<8x48xf32>
    %cst_47 = arith.constant dense<0.000000e+00> : vector<8xf32>
    %129 = vector.multi_reduction <add>, %128, %cst_47 [1] : vector<8x48xf32> to vector<8xf32>
    %130 = vector.shape_cast %129 : vector<8xf32> to vector<8x1xf32>
    %cst_48 = arith.constant 4.800000e+01 : f32
    %131 = vector.broadcast %cst_48 : f32 to vector<8x1xf32>
    %132 = arith.divf %130, %131 : vector<8x1xf32>
    %cst_49 = arith.constant 9.99999974E-6 : f32
    %133 = vector.broadcast %cst_49 : f32 to vector<8x1xf32>
    %134 = arith.addf %132, %133 : vector<8x1xf32>
    %135 = math.rsqrt %134 : vector<8x1xf32>
    %136 = vector.broadcast %135 : vector<8x1xf32> to vector<8x48xf32>
    %137 = arith.mulf %127, %136 : vector<8x48xf32>
    %138 = vector.broadcast %119 : vector<1x48xf32> to vector<8x48xf32>
    %139 = arith.mulf %137, %138 : vector<8x48xf32>
    %140 = vector.broadcast %121 : vector<1x48xf32> to vector<8x48xf32>
    %141 = arith.addf %139, %140 : vector<8x48xf32>
    %c0_50 = arith.constant 0 : index
    %c0_51 = arith.constant 0 : index
    %c0_52 = arith.constant 0 : index
    %142 = vector.load %arg11[%c0_50, %c0_51, %c0_52] : memref<1x48x96xbf16, #tpu.memory_space<vmem>>, vector<1x48x96xbf16>
    %143 = vector.shape_cast %142 : vector<1x48x96xbf16> to vector<48x96xbf16>
    %144 = arith.truncf %141 : vector<8x48xf32> to vector<8x48xbf16>
    %cst_53 = arith.constant dense<0.000000e+00> : vector<8x96xf32>
    %145 = tpu.matmul %144, %143, %cst_53 {dimension_numbers = #tpu.dot_dimension_numbers<[1], [0], [0], [1], [0, 0, 1, 1], [], []>} : vector<8x48xbf16>, vector<48x96xbf16>, vector<8x96xf32> -> vector<8x96xf32>
    %c0_54 = arith.constant 0 : index
    %c0_55 = arith.constant 0 : index
    %c0_56 = arith.constant 0 : index
    %146 = vector.load %arg12[%c0_54, %c0_55, %c0_56] : memref<1x1x96xf32, #tpu.memory_space<vmem>>, vector<1x1x96xf32>
    %147 = vector.shape_cast %146 : vector<1x1x96xf32> to vector<1x96xf32>
    %148 = vector.broadcast %147 : vector<1x96xf32> to vector<8x96xf32>
    %149 = arith.addf %145, %148 : vector<8x96xf32>
    %150 = math.tanh %149 : vector<8x96xf32>
    %c0_57 = arith.constant 0 : index
    %c0_58 = arith.constant 0 : index
    %c0_59 = arith.constant 0 : index
    %151 = vector.load %arg13[%c0_57, %c0_58, %c0_59] : memref<1x96x48xbf16, #tpu.memory_space<vmem>>, vector<1x96x48xbf16>
    %152 = vector.shape_cast %151 : vector<1x96x48xbf16> to vector<96x48xbf16>
    %153 = arith.truncf %150 : vector<8x96xf32> to vector<8x96xbf16>
    %cst_60 = arith.constant dense<0.000000e+00> : vector<8x48xf32>
    %154 = tpu.matmul %153, %152, %cst_60 {dimension_numbers = #tpu.dot_dimension_numbers<[1], [0], [0], [1], [0, 0, 1, 1], [], []>} : vector<8x96xbf16>, vector<96x48xbf16>, vector<8x48xf32> -> vector<8x48xf32>
    %155 = arith.addf %117, %154 : vector<8x48xf32>
    %c0_61 = arith.constant 0 : index
    %c0_62 = arith.constant 0 : index
    %c0_63 = arith.constant 0 : index
    %156 = vector.load %arg14[%c0_61, %c0_62, %c0_63] : memref<1x1x48xf32, #tpu.memory_space<vmem>>, vector<1x1x48xf32>
    %157 = vector.shape_cast %156 : vector<1x1x48xf32> to vector<1x48xf32>
    %158 = vector.broadcast %157 : vector<1x48xf32> to vector<8x48xf32>
    %159 = arith.addf %155, %158 : vector<8x48xf32>
    %c0_64 = arith.constant 0 : index
    %c0_65 = arith.constant 0 : index
    %160 = vector.load %arg20[%c0_64, %c0_65] : memref<8x48xf32, #tpu.memory_space<vmem>>, vector<8x48xf32>
    tpu.vector_store %arg20[%c0_64, %c0_65], %159 {strides = array<i32>} : memref<8x48xf32, #tpu.memory_space<vmem>>, vector<8x48xf32>,
    %c1_i32 = arith.constant 1 : i32
    %161 = arith.cmpi eq, %arg1, %c1_i32 : i32
    %162 = arith.extui %161 : i1 to i32
    %c0_i32_66 = arith.constant 0 : i32
    %163 = arith.cmpi ne, %162, %c0_i32_66 : i32
    scf.if %163 {
      %c0_67 = arith.constant 0 : index
      %c0_68 = arith.constant 0 : index
      %164 = vector.load %arg15[%c0_67, %c0_68] : memref<1x48xf32, #tpu.memory_space<vmem>>, vector<1x48xf32>
      %c0_69 = arith.constant 0 : index
      %c0_70 = arith.constant 0 : index
      %165 = vector.load %arg16[%c0_69, %c0_70] : memref<1x48xf32, #tpu.memory_space<vmem>>, vector<1x48xf32>
      %cst_71 = arith.constant dense<0.000000e+00> : vector<8xf32>
      %166 = vector.multi_reduction <add>, %159, %cst_71 [1] : vector<8x48xf32> to vector<8xf32>
      %167 = vector.shape_cast %166 : vector<8xf32> to vector<8x1xf32>
      %cst_72 = arith.constant 4.800000e+01 : f32
      %168 = vector.broadcast %cst_72 : f32 to vector<8x1xf32>
      %169 = arith.divf %167, %168 : vector<8x1xf32>
      %170 = vector.broadcast %169 : vector<8x1xf32> to vector<8x48xf32>
      %171 = arith.subf %159, %170 : vector<8x48xf32>
      %172 = arith.mulf %171, %171 : vector<8x48xf32>
      %cst_73 = arith.constant dense<0.000000e+00> : vector<8xf32>
      %173 = vector.multi_reduction <add>, %172, %cst_73 [1] : vector<8x48xf32> to vector<8xf32>
      %174 = vector.shape_cast %173 : vector<8xf32> to vector<8x1xf32>
      %cst_74 = arith.constant 4.800000e+01 : f32
      %175 = vector.broadcast %cst_74 : f32 to vector<8x1xf32>
      %176 = arith.divf %174, %175 : vector<8x1xf32>
      %cst_75 = arith.constant 9.99999974E-6 : f32
      %177 = vector.broadcast %cst_75 : f32 to vector<8x1xf32>
      %178 = arith.addf %176, %177 : vector<8x1xf32>
      %179 = math.rsqrt %178 : vector<8x1xf32>
      %180 = vector.broadcast %179 : vector<8x1xf32> to vector<8x48xf32>
      %181 = arith.mulf %171, %180 : vector<8x48xf32>
      %182 = vector.broadcast %164 : vector<1x48xf32> to vector<8x48xf32>
      %183 = arith.mulf %181, %182 : vector<8x48xf32>
      %184 = vector.broadcast %165 : vector<1x48xf32> to vector<8x48xf32>
      %185 = arith.addf %183, %184 : vector<8x48xf32>
      %c0_76 = arith.constant 0 : index
      %c0_77 = arith.constant 0 : index
      %186 = vector.load %arg17[%c0_76, %c0_77] : memref<48x512xbf16, #tpu.memory_space<vmem>>, vector<48x512xbf16>
      %187 = arith.truncf %185 : vector<8x48xf32> to vector<8x48xbf16>
      %cst_78 = arith.constant dense<0.000000e+00> : vector<8x512xf32>
      %188 = tpu.matmul %187, %186, %cst_78 {dimension_numbers = #tpu.dot_dimension_numbers<[1], [0], [0], [1], [0, 0, 1, 1], [], []>} : vector<8x48xbf16>, vector<48x512xbf16>, vector<8x512xf32> -> vector<8x512xf32>
      %c0_79 = arith.constant 0 : index
      %c0_80 = arith.constant 0 : index
      %189 = vector.load %arg18[%c0_79, %c0_80] : memref<1x512xf32, #tpu.memory_space<vmem>>, vector<1x512xf32>
      %190 = vector.broadcast %189 : vector<1x512xf32> to vector<8x512xf32>
      %191 = arith.addf %188, %190 : vector<8x512xf32>
      %c0_81 = arith.constant 0 : index
      %c0_82 = arith.constant 0 : index
      %c0_83 = arith.constant 0 : index
      %192 = vector.load %arg19[%c0_81, %c0_82, %c0_83] : memref<1x8x512xf32, #tpu.memory_space<vmem>>, vector<1x8x512xf32>
      %193 = vector.shape_cast %192 : vector<1x8x512xf32> to vector<8x512xf32>
      %194 = vector.shape_cast %191 : vector<8x512xf32> to vector<1x8x512xf32>
      tpu.vector_store %arg19[%c0_81, %c0_82, %c0_83], %194 {strides = array<i32>} : memref<1x8x512xf32, #tpu.memory_space<vmem>>, vector<1x8x512xf32>,
    } else {
    }
    return
  }
  func.func @transform_0(%arg0: i32, %arg1: i32) -> (i32, i32, i32) {
    %c0_i32 = arith.constant 0 : i32
    %c0_i32_0 = arith.constant 0 : i32
    %c0_i32_1 = arith.constant 0 : i32
    return %arg0, %c0_i32, %c0_i32_0 : i32, i32, i32
  }
  func.func @transform_1(%arg0: i32, %arg1: i32) -> (i32, i32) {
    %c0_i32 = arith.constant 0 : i32
    %c0_i32_0 = arith.constant 0 : i32
    %c0_i32_1 = arith.constant 0 : i32
    return %c0_i32, %c0_i32_0 : i32, i32
  }
  func.func @transform_2(%arg0: i32, %arg1: i32) -> (i32, i32, i32) {
    %c0_i32 = arith.constant 0 : i32
    %c0_i32_0 = arith.constant 0 : i32
    %c0_i32_1 = arith.constant 0 : i32
    return %arg1, %c0_i32, %c0_i32_0 : i32, i32, i32
  }
  func.func @transform_3(%arg0: i32, %arg1: i32) -> (i32, i32, i32) {
    %c0_i32 = arith.constant 0 : i32
    %c0_i32_0 = arith.constant 0 : i32
    %c0_i32_1 = arith.constant 0 : i32
    return %arg1, %c0_i32, %c0_i32_0 : i32, i32, i32
  }
  func.func @transform_4(%arg0: i32, %arg1: i32) -> (i32, i32, i32) {
    %c0_i32 = arith.constant 0 : i32
    %c0_i32_0 = arith.constant 0 : i32
    %c0_i32_1 = arith.constant 0 : i32
    return %arg1, %c0_i32, %c0_i32_0 : i32, i32, i32
  }
  func.func @transform_5(%arg0: i32, %arg1: i32) -> (i32, i32, i32) {
    %c0_i32 = arith.constant 0 : i32
    %c0_i32_0 = arith.constant 0 : i32
    %c0_i32_1 = arith.constant 0 : i32
    return %arg1, %c0_i32, %c0_i32_0 : i32, i32, i32
  }
  func.func @transform_6(%arg0: i32, %arg1: i32) -> (i32, i32, i32) {
    %c0_i32 = arith.constant 0 : i32
    %c0_i32_0 = arith.constant 0 : i32
    %c0_i32_1 = arith.constant 0 : i32
    return %arg1, %c0_i32, %c0_i32_0 : i32, i32, i32
  }
  func.func @transform_7(%arg0: i32, %arg1: i32) -> (i32, i32, i32) {
    %c0_i32 = arith.constant 0 : i32
    %c0_i32_0 = arith.constant 0 : i32
    %c0_i32_1 = arith.constant 0 : i32
    return %arg1, %c0_i32, %c0_i32_0 : i32, i32, i32
  }
  func.func @transform_8(%arg0: i32, %arg1: i32) -> (i32, i32, i32) {
    %c0_i32 = arith.constant 0 : i32
    %c0_i32_0 = arith.constant 0 : i32
    %c0_i32_1 = arith.constant 0 : i32
    return %arg1, %c0_i32, %c0_i32_0 : i32, i32, i32
  }
  func.func @transform_9(%arg0: i32, %arg1: i32) -> (i32, i32, i32) {
    %c0_i32 = arith.constant 0 : i32
    %c0_i32_0 = arith.constant 0 : i32
    %c0_i32_1 = arith.constant 0 : i32
    return %arg1, %c0_i32, %c0_i32_0 : i32, i32, i32
  }
  func.func @transform_10(%arg0: i32, %arg1: i32) -> (i32, i32, i32) {
    %c0_i32 = arith.constant 0 : i32
    %c0_i32_0 = arith.constant 0 : i32
    %c0_i32_1 = arith.constant 0 : i32
    return %arg1, %c0_i32, %c0_i32_0 : i32, i32, i32
  }
  func.func @transform_11(%arg0: i32, %arg1: i32) -> (i32, i32, i32) {
    %c0_i32 = arith.constant 0 : i32
    %c0_i32_0 = arith.constant 0 : i32
    %c0_i32_1 = arith.constant 0 : i32
    return %arg1, %c0_i32, %c0_i32_0 : i32, i32, i32
  }
  func.func @transform_12(%arg0: i32, %arg1: i32) -> (i32, i32, i32) {
    %c0_i32 = arith.constant 0 : i32
    %c0_i32_0 = arith.constant 0 : i32
    %c0_i32_1 = arith.constant 0 : i32
    return %arg1, %c0_i32, %c0_i32_0 : i32, i32, i32
  }
  func.func @transform_13(%arg0: i32, %arg1: i32) -> (i32, i32) {
    %c0_i32 = arith.constant 0 : i32
    %c0_i32_0 = arith.constant 0 : i32
    %c0_i32_1 = arith.constant 0 : i32
    return %c0_i32, %c0_i32_0 : i32, i32
  }
  func.func @transform_14(%arg0: i32, %arg1: i32) -> (i32, i32) {
    %c0_i32 = arith.constant 0 : i32
    %c0_i32_0 = arith.constant 0 : i32
    %c0_i32_1 = arith.constant 0 : i32
    return %c0_i32, %c0_i32_0 : i32, i32
  }
  func.func @transform_15(%arg0: i32, %arg1: i32) -> (i32, i32) {
    %c0_i32 = arith.constant 0 : i32
    %c0_i32_0 = arith.constant 0 : i32
    %c0_i32_1 = arith.constant 0 : i32
    return %c0_i32, %c0_i32_0 : i32, i32
  }
  func.func @transform_16(%arg0: i32, %arg1: i32) -> (i32, i32) {
    %c0_i32 = arith.constant 0 : i32
    %c0_i32_0 = arith.constant 0 : i32
    %c0_i32_1 = arith.constant 0 : i32
    return %c0_i32, %c0_i32_0 : i32, i32
  }
  func.func @transform_17(%arg0: i32, %arg1: i32) -> (i32, i32, i32) {
    %c0_i32 = arith.constant 0 : i32
    %c0_i32_0 = arith.constant 0 : i32
    %c0_i32_1 = arith.constant 0 : i32
    return %arg0, %c0_i32, %c0_i32_0 : i32, i32, i32
  }
}

</mosaic_0001>

<bundles_post_ra>
// kernel: vit_decoder3d_forward.1
= control target key start
LH: loop header
LB: loop body
LE: loop exit
PB: predicated region body
PF: predicated region fallthrough
CT: control target
= control target key end

     0   :  { %s2455_s24 = smov 0   ;;  %s2457_s25 = smov 0   ;;  %s2776_s0 = inlined_call_operand.vmem [shape: f32[2,8,48], index: 0, kind: input, shape index: {}]   ;;  %s2777_s1 = inlined_call_operand.vmem [shape: f32[8,48], index: 1, kind: input, shape index: {}]   ;;  %s2778_s2 = inlined_call_operand.vmem [shape: f32[2,1,48], index: 2, kind: input, shape index: {}]   ;;  %s2779_s3 = inlined_call_operand.vmem [shape: f32[2,1,48], index: 3, kind: input, shape index: {}]   ;;  %s2780_s4 = inlined_call_operand.vmem [shape: bf16[2,48,192], index: 4, kind: input, shape index: {}]   ;;  %s2781_s5 = inlined_call_operand.vmem [shape: bf16[2,64,48], index: 5, kind: input, shape index: {}]   ;;  %s2782_s6 = inlined_call_operand.vmem [shape: f32[2,1,48], index: 6, kind: input, shape index: {}]   ;;  %s2783_s7 = inlined_call_operand.vmem [shape: f32[2,1,48], index: 7, kind: input, shape index: {}]   ;;  %s2784_s8 = inlined_call_operand.vmem [shape: f32[2,1,48], index: 8, kind: input, shape index: {}]   ;;  %s2785_s9 = inlined_call_operand.vmem [shape: bf16[2,48,96], index: 9, kind: input, shape index: {}]   ;;  %s2786_s10 = inlined_call_operand.vmem [shape: f32[2,1,96], index: 10, kind: input, shape index: {}]   ;;  %s2787_s11 = inlined_call_operand.vmem [shape: bf16[2,96,48], index: 11, kind: input, shape index: {}]   ;;  %s2788_s12 = inlined_call_operand.vmem [shape: f32[2,1,48], index: 12, kind: input, shape index: {}]   ;;  %s2789_s13 = inlined_call_operand.vmem [shape: f32[1,48], index: 13, kind: input, shape index: {}]   ;;  %s2790_s14 = inlined_call_operand.vmem [shape: f32[1,48], index: 14, kind: input, shape index: {}]   ;;  %s2791_s15 = inlined_call_operand.vmem [shape: bf16[48,512], index: 15, kind: input, shape index: {}]   ;;  %s2792_s16 = inlined_call_operand.vmem [shape: f32[1,512], index: 16, kind: input, shape index: {}]   ;;  %s2793_s17 = inlined_call_operand.vmem [shape: f32[2,8,512], index: 17, kind: output, shape index: {}]  }
   0x1   :  { %2799 = sst [smem:[#allocation9_spill]] %s2776_s0  ;;  %s2459_s26 = smov 0  }
   0x2   :  { %2800 = sst [smem:[#allocation10_spill]] %s2777_s1  ;;  %s2461_s27 = smov 0  }
   0x3   :  { %2801 = sst [smem:[#allocation11_spill]] %s2780_s4  ;;  %s2463_s28 = smov 0  }
   0x4   :  { %2802 = sst [smem:[#allocation12_spill]] %s2781_s5 }
   0x5   :  { %2803 = sst [smem:[#allocation13_spill]] %s2784_s8 }
   0x6   :  { %2804 = sst [smem:[#allocation14_spill]] %s2785_s9 }
   0x7   :  { %2805 = sst [smem:[#allocation15_spill]] %s2789_s13 }
   0x8   :  { %2806 = sst [smem:[#allocation16_spill]] %s2790_s14 }
   0x9   :  { %2807 = sst [smem:[#allocation17_spill]] %s2791_s15 }
   0xa   :  { %2808 = sst [smem:[#allocation18_spill]] %s2792_s16 }
   0xb   :  { %2809 = sst [smem:[#allocation19_spill]] %s2793_s17 }
   0xc LB: > { %2810 = sst [smem:[#allocation3_spill]] %s2336_s24  ;;  %s36_s29 = sadd.s32 1, %s2344_s26  ;;  %s2352_s28 = sphi %s2463_s28, %s27_s28   ;;  %s2348_s27 = sphi %s2461_s27, %s2839_s27   ;;  %s2344_s26 = sphi %s2459_s26, %s2838_s26   ;;  %s2340_s25 = sphi %s2457_s25, %s2837_s25   ;;  %s2336_s24 = sphi %s2455_s24, %s2836_s24  }
   0xd   : > { %2811 = sst [smem:[#allocation4_spill]] %s2344_s26  ;;  %s39_s0 = sadd.s32 1, %s2348_s27 }
   0xe   : > { %2812 = sst [smem:[#allocation5_spill]] %s2348_s27  ;;  %p37_p0 = scmp.ge.s32.totalorder %s36_s29, 2 }
   0xf   : > { %2813 = sst [smem:[#allocation6_spill]] %s2352_s28  ;;  %p2010_p1 = scmp.ge.s32.totalorder %s2352_s28, 1 }
  0x10   : > { %p594_p2 = scmp.lt.s32.totalorder %s2352_s28, 5  ;;  %s2841_s29 = smov (%p37_p0, %s36_s29), 0 }
  0x11   : > { %2814 = sst [smem:[#allocation7_spill]] %s2841_s29  ;;  %s2843_s0 = smov (!%p37_p0, %s39_s0), %s2348_s27 }
  0x12   : > { %p595_p3 = pnand %p2010_p1, %p594_p2  ;;  %p41_p4 = scmp.ge.s32.totalorder %s2843_s0, 2 }
  0x13   : > { %p686_p5 = scmp.lt.s32.totalorder (!%p595_p3), %s2340_s25, 1  ;;  %p690_p6 = scmp.lt.s32.totalorder (!%p595_p3), %s2336_s24, 1 }
  0x14   : > { %s2845_s0 = smov (%p41_p4, %s2843_s0), 0  ;;  %598 = sbr.rel (%p595_p3) target bundleno = 2992 (0xbb0), region = 88 }
  0x15   : > { %2815 = sst [smem:[#allocation8_spill]] %s2845_s0 }
  0x16   : > { %s2816_s21 = sld [smem:[#allocation9_spill]] (!%p595_p3) }
  0x17   : > { %s2817_s4 = sld [smem:[#allocation11_spill]] (!%p595_p3) }
  0x18   : > { %s2818_s5 = sld [smem:[#allocation12_spill]] (!%p595_p3) }
  0x19   : > { %s2847_s25 = smov (!%p686_p5, %s2340_s25), 1  ;;  %s2820_s26 = sld [smem:[#allocation14_spill]] }
  0x1a   : > { %s2489_s30 = scalar_select %p690_p6, %s2336_s24, 1 }
  0x1b   : > { %s2011_s18 = sshll.u32 %s2847_s25, 3  ;;  %s2078_s19 = sshll.u32 %s2847_s25, 5 }
  0x1c   : > { %s689_s22 = scalar_lea.vmem %s2816_s21, %s2011_s18  ;;  %s2197_s16 = smul.u32 48, %s2489_s30 }
  0x1d   : > { %s2077_s14 = sshll.u32 %s2489_s30, 5  ;;  %s2198_s13 = smul.u32 24, %s2489_s30 }
  0x1e   : > { %s2511_s9 = scalar_lea.vmem %s2817_s4, %s2197_s16  ;;  %s2516_s0 = scalar_lea.vmem %s2818_s5, %s2077_s14 }
  0x1f   : > { %s722_s17 = scalar_lea.vmem %s2786_s10, %s2489_s30  ;;  %s2534_s4 = scalar_lea.vmem %s2787_s11, %s2197_s16 }
  0x20   : > { %s730_s1 = scalar_lea.vmem %s2788_s12, %s2489_s30  ;;  %s2543_s5 = scalar_lea.vmem %s2820_s26, %s2198_s13 }
  0x21   : > { %s2821_s28 = sld [smem:[#allocation19_spill]] }
  0x22   : > { %s2822_s24 = sld [smem:[#allocation3_spill]] }
  0x27   : > { %s2548_s8 = scalar_lea.vmem %s2821_s28, %s2078_s19 }
  0x28   : > { %p2019_p7 = scmp.ne.s32.totalorder %s2822_s24, 0 }
  0x29   : > { %s2823_s15 = sld [smem:[#allocation10_spill]] (!%p2019_p7) }
  0x2a   : > { %740 = sbr.rel (%p2019_p7) target bundleno = 52 (0x34), region = 92 }
  0x2f   : > { %v741_v0 = vld [vmem:[%s689_s22] sm:$0xff]  ;;  %vm744_vm0 = vcmask 392192  }
  0x30   : > { %v742_v1 = vld [vmem:[%s2823_s15] sm:$0xff] }
  0x31   : > { %v743_v2 = vadd.f32 %v742_v1, %v741_v0 }
  0x33   : > { %745 = vst.msk [vmem:[#allocation2] sm:$0xff] %vm744_vm0, %v743_v2 }
  0x34 PF: > { %vm749_vm1 = vcmask 392192   ;;  %v2250_v10 = vld [vmem:[%s2511_s9 + $0x24] ss:$8 sps:$4 sm:$0xff]   ;;  %v2252_v11 = vld [vmem:[%s2511_s9 + $0x20] ss:$8 sps:$4 sm:$0xff]   ;;  %v2354_v14 = vmov 0   ;;  %s2824_s22 = scalar_lea.vmem %s2778_s2, %s2489_s30  ;;  %s2825_s25 = scalar_lea.vmem %s2779_s3, %s2489_s30 }
  0x35   : > { %v2253_v12 = vld [vmem:[%s2511_s9 + $0x14] ss:$8 sps:$4 sm:$0xff]   ;;  %828 = vmatprep.subr.bf16.mxu1 %v2250_v10  ;;  %v2255_v13 = vld [vmem:[%s2511_s9 + $0x10] ss:$8 sps:$4 sm:$0xff]   ;;  %850 = vmatprep.mubr.bf16.mxu1 %v2354_v14  ;;  %v2256_v15 = vld [vmem:[%s2511_s9 + $0x4] ss:$8 sps:$4 sm:$0xff]   ;;  %s2826_s16 = scalar_lea.vmem %s2782_s6, %s2489_s30  ;;  %s2827_s28 = scalar_lea.vmem %s2783_s7, %s2489_s30 }
  0x36   : > { %829 = vmatpush1.bf16.msra.mxu1 %v2252_v11  ;;  %v2258_v16 = vld [vmem:[%s2511_s9] ss:$8 sps:$4 sm:$0xff]   ;;  %v2355_v27 = vmov 0.0   ;;  %vm2356_vm2 = vmmov 0   ;;  %s2357_s9 = smov 112   ;;  %s2358_s14 = smov 64  }
  0x37   : > { %830 = vmatprep.subr.bf16.mxu1 %v2253_v12  ;;  %v2020_v21 = vld [vmem:[%s2824_s22] ss:$0 sm:$0xff]  ;;  %2123 = vmatprep.subr.bf16.mxu0 %v2355_v27  ;;  %s2359_s18 = smov 48   ;;  %s2360_s20 = smov 32   ;;  %vm863_vm3 = vcmask 130048   ;;  %vm927_vm4 = vcmask 1043456  }
  0x38   : > { %v2021_v23 = vld [vmem:[%s2825_s25] ss:$0 sm:$0xff]  ;;  %2125 = vmatprep.mubr.msk.bf16.mxu0 %vm2356_vm2, %v2355_v27  ;;  %s2361_s21 = smov 96   ;;  %s2362_s27 = smov 16   ;;  %vm910_vm5 = vcmask 64512   ;;  %vm1315_vm6 = vcmask 261120  }
  0x39   : > { %s2363_s23 = smov 80   ;;  %vm1351_vm7 = vcmask 523264   ;;  %s2828_s22 = sld [smem:[#allocation13_spill]]  ;;  %vm1558_vm8 = vcmask 785408  }
  0x3a   : > { %v2554_v3 = vld [vmem:[#allocation2] sm:$0xff]  ;;  %831 = vmatpush1.bf16.msra.mxu1 %v2255_v13 }
  0x3b   : > { %v750_v4 = vsel %vm749_vm1, %v2554_v3, 0.0  ;;  %832 = vmatprep.subr.bf16.mxu1 %v2256_v15 }
  0x3c   : > { %751 = vadd.xlane.f32.xlu0 %v750_v4 }
  0x3e   : > { %833 = vmatpush1.bf16.msra.mxu1 %v2258_v16 }
  0x3f   : > { %2111 = vmatprep.subr.bf16.mxu1 %v2355_v27  ;;  %s2829_s26 = scalar_lea.vmem %s2828_s22, %s2489_s30 }
  0xc5   : > { %v752_v5 = vpop.xlane.xlu0 %751 }
  0xc6   : > { %v754_v6 = vmul.f32 0.020833334, %v752_v5 }
  0xc8   : > { %v755_v7 = vsub.f32 %v2554_v3, %v754_v6 }
  0xca   : > { %v756_v8 = vmul.f32 %v755_v7, %v755_v7 }
  0xcc   : > { %v757_v9 = vsel %vm749_vm1, %v756_v8, 0.0 }
  0xcd   : > { %758 = vadd.xlane.f32.xlu0 %v757_v9 }
 0x156   : > { %v759_v17 = vpop.xlane.xlu0 %758 }
 0x157   : > { %v760_v18 = vmul.f32 0.020833334, %v759_v17 }
 0x159   : > { %v761_v19 = vadd.f32 1e-05, %v760_v18 }
 0x15b   : > { %2272 = vrsqrt.f32 %v761_v19 }
 0x168   : > { %v2273_v20 = vpop.eup %2272 }
 0x169   : > { %v763_v22 = vmul.f32 %v2273_v20, %v755_v7 }
 0x16b   : > { %v770_v24 = vmul.f32 %v2020_v21, %v763_v22 }
 0x16d   : > { %v777_v25 = vadd.f32 %v2021_v23, %v770_v24 }
 0x16f   : > { %v778_v26 = vpack.c.bf16 %v777_v25, %v777_v25 }
 0x171   : > { %2028 = vmatmul.mubr.msk.bf16.vlgmr.msra.gmra.mxu1 %vm749_vm1, %v778_v26 }
 0x172   : > { %2113 = vmatprep.mubr.msk.bf16.mxu1 %vm2356_vm2, %v2355_v27 }
 0x231   : > { %v852_v28 = vpop.f32.mrf.mxu1 }
 0x232   : > { %v859_v29 = vpack.c.bf16 %v852_v28, %v852_v28 }
 0x233   : > { %v854_v30 = vpop.f32.mrf.mxu1 }
 0x234   : > { %971 = vrot.lane.b32.xlu0 %v859_v29, %s2357_s9  ;;  %861 = vrot.lane.b32.xlu1 %v859_v29, %s2358_s14  ;;  %v2591_v36 = vpack.c.bf16 %v854_v30, %v854_v30 }
 0x235   : > { %v856_v31 = vpop.f32.mrf.mxu1 }
 0x236   : > { %v929_v39 = vsel %vm927_vm4, %v2591_v36, 0 }
 0x237   : > { %v857_v32 = vpop.f32.mrf.mxu1 }
 0x238   : > { %973 = vrot.lane.b32.xlu1 %v859_v29, %s2359_s18 }
 0x23c   : > { %1084 = vrot.lane.b32.xlu1 %v859_v29, %s2360_s20 }
 0x240   : > { %1082 = vrot.lane.b32.xlu1 %v859_v29, %s2361_s21 }
 0x244   : > { %1194 = vrot.lane.b32.xlu1 %v859_v29, %s2362_s27 }
 0x248   : > { %1192 = vrot.lane.b32.xlu1 %v859_v29, %s2363_s23 }
 0x2a6   : > { %v862_v33 = vpop.permute.xlu1 %861  ;;  %v972_v40 = vpop.permute.xlu0 %971 }
 0x2a7   : > { %v868_v34 = vsel %vm863_vm3, %v862_v33, 0 }
 0x2a8   : > { %2112 = vmatpush3.bf16.xpose.msra.mxu1 %v868_v34 }
 0x2a9   : > { %2117 = vmatprep.subr.bf16.mxu1 %v2355_v27 }
 0x2aa   : > { %v974_v35 = vpop.permute.xlu1 %973 }
 0x2ab   : > { %v979_v37 = vsel %vm863_vm3, %v974_v35, 0 }
 0x2ac   : > { %2124 = vmatpush3.bf16.xpose.msra.mxu0 %v979_v37 }
 0x2ad   : > { %2135 = vmatprep.subr.bf16.mxu0 %v2355_v27 }
 0x2ae   : > { %v1085_v38 = vpop.permute.xlu1 %1084 }
 0x2af   : > { %2114 = vmatmul.mubr.msk.bf16.vlgmr.msra.gmra.mxu1 %vm863_vm3, %v859_v29  ;;  %v1090_v42 = vsel %vm863_vm3, %v1085_v38, 0 }
 0x2b0   : > { %2118 = vmatpush3.bf16.msra.mxu1 %v929_v39  ;;  %2119 = vmatprep.mubr.msk.bf16.mxu1 %vm2356_vm2, %v2355_v27 }
 0x2b1   : > { %2129 = vmatprep.subr.bf16.mxu1 %v2355_v27 }
 0x2b2   : > { %v1083_v41 = vpop.permute.xlu1 %1082 }
 0x2b3   : > { %2126 = vmatmul.mubr.msk.bf16.vlgmr.msra.gmra.mxu0 %vm863_vm3, %v972_v40 }
 0x2b4   : > { %2136 = vmatpush3.bf16.xpose.msra.mxu0 %v1090_v42  ;;  %2137 = vmatprep.mubr.msk.bf16.mxu0 %vm2356_vm2, %v2355_v27 }
 0x2b5   : > { %2147 = vmatprep.subr.bf16.mxu0 %v2355_v27 }
 0x2b6   : > { %v1195_v43 = vpop.permute.xlu1 %1194 }
 0x2b7   : > { %v1200_v44 = vsel %vm863_vm3, %v1195_v43, 0 }
 0x2ba   : > { %v1193_v45 = vpop.permute.xlu1 %1192 }
 0x2bb   : > { %2138 = vmatmul.mubr.msk.bf16.vlgmr.msra.gmra.mxu0 %vm863_vm3, %v1083_v41 }
 0x2bc   : > { %2148 = vmatpush3.bf16.xpose.msra.mxu0 %v1200_v44  ;;  %2149 = vmatprep.mubr.msk.bf16.mxu0 %vm2356_vm2, %v2355_v27 }
 0x2bd   : > { %2159 = vmatprep.subr.bf16.mxu0 %v2355_v27 }
 0x2c3   : > { %2150 = vmatmul.mubr.msk.bf16.vlgmr.msra.gmra.mxu0 %vm863_vm3, %v1193_v45 }
 0x2c4   : > { %2167 = vmatprep.mubr.msk.bf16.mxu0 %vm2356_vm2, %v2355_v27 }
 0x36f   : > { %v904_v46 = vpop.f32.mrf.mxu1 }
 0x370   : > { %v911_v47 = vsel %vm910_vm5, %v904_v46, -inf }
 0x371   : > { %912 = vmax.xlane.f32.xlu1 %v911_v47  ;;  %v2115_v48 = vpop.f32.mrf.mxu1 }
 0x373   : > { %v907_v49 = vpop.f32.mrf.mxu1  ;;  %v1015_v50 = vpop.f32.mrf.mxu0 }
 0x374   : > { %v1021_v51 = vsel %vm910_vm5, %v1015_v50, -inf }
 0x375   : > { %1022 = vmax.xlane.f32.xlu0 %v1021_v51  ;;  %v2116_v52 = vpop.f32.mrf.mxu1  ;;  %v2127_v53 = vpop.f32.mrf.mxu0 }
 0x377   : > { %v1018_v54 = vpop.f32.mrf.mxu0 }
 0x379   : > { %v2128_v55 = vpop.f32.mrf.mxu0 }
 0x37a   : > { %v2260_v55 = vld [vmem:[%s2516_s0 + $0x10] sm:$0xff]  }
 0x37b   : > { %v1126_v56 = vpop.f32.mrf.mxu0 }
 0x37c   : > { %v1132_v57 = vsel %vm910_vm5, %v1126_v56, -inf }
 0x37d   : > { %v2139_v58 = vpop.f32.mrf.mxu0  ;;  %1133 = vmax.xlane.f32.xlu1 %v1132_v57  ;;  %v2262_v57 = vld [vmem:[%s2516_s0] sm:$0xff]  }
 0x37f   : > { %v1129_v59 = vpop.f32.mrf.mxu0 }
 0x381   : > { %v2140_v60 = vpop.f32.mrf.mxu0 }
 0x383   : > { %v1236_v61 = vpop.f32.mrf.mxu0 }
 0x384   : > { %v1242_v62 = vsel %vm910_vm5, %v1236_v61, -inf }
 0x385   : > { %1243 = vmax.xlane.f32.xlu0 %v1242_v62  ;;  %v2151_v63 = vpop.f32.mrf.mxu0 }
 0x387   : > { %v1239_v0 = vpop.f32.mrf.mxu0 }
 0x389   : > { %v2152_v1 = vpop.f32.mrf.mxu0 }
 0x3fa   : > { %v913_v2 = vpop.xlane.xlu1 %912 }
 0x3fb   : > { %v914_v4 = vsub.f32 %v904_v46, %v913_v2  ;;  %v2259_v46 = vld [vmem:[%s2516_s0 + $0x18] sm:$0xff]  }
 0x3fc   : > { %2160 = vmatpush3.bf16.msra.mxu0 %v2259_v46 }
 0x3fd   : > { %v915_v5 = vmul.f32 1.442695, %v914_v4  ;;  %2161 = vmatprep.subr.bf16.mxu0 %v2355_v27 }
 0x3fe   : > { %v1023_v6 = vpop.xlane.xlu0 %1022 }
 0x3ff   : > { %2274 = vpow2.f32 %v915_v5  ;;  %v1024_v7 = vsub.f32 %v1015_v50, %v1023_v6 }
 0x400   : > { %2162 = vmatpush3.bf16.msra.mxu0 %v2260_v55 }
 0x401   : > { %v1025_v8 = vmul.f32 1.442695, %v1024_v7  ;;  %2163 = vmatprep.subr.bf16.mxu0 %v2355_v27 }
 0x403   : > { %2276 = vpow2.f32 %v1025_v8 }
 0x406   : > { %v1134_v18 = vpop.xlane.xlu1 %1133 }
 0x407   : > { %v1135_v19 = vsub.f32 %v1126_v56, %v1134_v18  ;;  %v2261_v56 = vld [vmem:[%s2516_s0 + $0x8] sm:$0xff]  }
 0x408   : > { %2164 = vmatpush3.bf16.msra.mxu0 %v2261_v56 }
 0x409   : > { %v1136_v20 = vmul.f32 1.442695, %v1135_v19  ;;  %2165 = vmatprep.subr.bf16.mxu0 %v2355_v27 }
 0x40c   : > { %v2275_v9 = vpop.eup %2274  ;;  %2166 = vmatpush3.bf16.msra.mxu0 %v2262_v57 }
 0x40d   : > { %v917_v10 = vsel %vm910_vm5, %v2275_v9, 0.0  ;;  %2181 = vmatprep.subr.bf16.mxu0 %v2355_v27 }
 0x40e   : > { %v1244_v11 = vpop.xlane.xlu0 %1243  ;;  %918 = vadd.xlane.f32.xlu1 %v917_v10 }
 0x40f   : > { %v1245_v12 = vsub.f32 %v1236_v61, %v1244_v11  ;;  %v2042_v11 = vld [vmem:[%s2826_s16] ss:$0 sm:$0xff] }
 0x410   : > { %v2277_v13 = vpop.eup %2276 }
 0x411   : > { %v1246_v14 = vmul.f32 1.442695, %v1245_v12  ;;  %v1027_v15 = vsel %vm910_vm5, %v2277_v13, 0.0 }
 0x412   : > { %1028 = vadd.xlane.f32.xlu0 %v1027_v15 }
 0x413   : > { %2278 = vpow2.f32 %v1246_v14 }
 0x414   : > { %2280 = vpow2.f32 %v1136_v20 }
 0x41f   : > { %1034 = vrot.lane.b32.xlu1 %v2591_v36, %s2357_s9 }
 0x420   : > { %v2279_v16 = vpop.eup %2278 }
 0x421   : > { %v1248_v17 = vsel %vm910_vm5, %v2279_v16, 0.0  ;;  %v2281_v21 = vpop.eup %2280 }
 0x422   : > { %1249 = vadd.xlane.f32.xlu0 %v1248_v17  ;;  %v1138_v22 = vsel %vm910_vm5, %v2281_v21, 0.0 }
 0x438   : > { %1144 = vrot.lane.b32.xlu0 %v2591_v36, %s2361_s21 }
 0x443   : > { %1139 = vadd.xlane.f32.xlu1 %v1138_v22 }
 0x454   : > { %1254 = vrot.lane.b32.xlu1 %v2591_v36, %s2363_s23 }
 0x497   : > { %v919_v23 = vpop.xlane.xlu1 %918 }
 0x498   : > { %2282 = vrcp.f32 %v919_v23  ;;  %v2263_v23 = vld [vmem:[%s2543_s5 + $0x10] sm:$0xff]  }
 0x49b   : > { %v1029_v24 = vpop.xlane.xlu0 %1028  ;;  %v1035_v28 = vpop.permute.xlu1 %1034 }
 0x49c   : > { %2284 = vrcp.f32 %v1029_v24  ;;  %v1040_v31 = vsel %vm927_vm4, %v1035_v28, 0  ;;  %v2265_v24 = vld [vmem:[%s2543_s5] sm:$0xff]  }
 0x4a5   : > { %v2283_v25 = vpop.eup %2282 }
 0x4a6   : > { %v921_v26 = vmul.f32 %v2283_v25, %v2275_v9  ;;  %v2266_v25 = vld [vmem:[%s2534_s4 + $0x28] sm:$0xff]  }
 0x4a8   : > { %v922_v29 = vpack.c.bf16 %v921_v26, %v921_v26 }
 0x4a9   : > { %v2285_v30 = vpop.eup %2284 }
 0x4aa   : > { %2120 = vmatmul.mubr.msk.bf16.vlgmr.msra.gmra.mxu1 %vm910_vm5, %v922_v29  ;;  %v1031_v33 = vmul.f32 %v2285_v30, %v2277_v13 }
 0x4ab   : > { %2130 = vmatpush3.bf16.msra.mxu1 %v1040_v31  ;;  %v1250_v32 = vpop.xlane.xlu0 %1249  ;;  %2131 = vmatprep.mubr.msk.bf16.mxu1 %vm2356_vm2, %v2355_v27  ;;  %v2043_v31 = vld [vmem:[%s2827_s28] ss:$0 sm:$0xff] }
 0x4ac   : > { %2141 = vmatprep.subr.bf16.mxu1 %v2355_v27  ;;  %v1032_v36 = vpack.c.bf16 %v1031_v33, %v1031_v33  ;;  %v2044_v33 = vld [vmem:[%s2829_s26] ss:$0 sm:$0xff] }
 0x4af   : > { %v1145_v34 = vpop.permute.xlu0 %1144 }
 0x4b0   : > { %v1150_v35 = vsel %vm927_vm4, %v1145_v34, 0 }
 0x4b2   : > { %2132 = vmatmul.mubr.msk.bf16.vlgmr.msra.gmra.mxu1 %vm910_vm5, %v1032_v36 }
 0x4b3   : > { %2142 = vmatpush3.bf16.msra.mxu1 %v1150_v35  ;;  %2143 = vmatprep.mubr.msk.bf16.mxu1 %vm2356_vm2, %v2355_v27 }
 0x4b4   : > { %2153 = vmatprep.subr.bf16.mxu1 %v2355_v27 }
 0x4cc   : > { %v1140_v37 = vpop.xlane.xlu1 %1139 }
 0x4cd   : > { %2286 = vrcp.f32 %v1140_v37  ;;  %v2267_v37 = vld [vmem:[%s2534_s4 + $0x20] sm:$0xff]  }
 0x4ce   : > { %2288 = vrcp.f32 %v1250_v32 }
 0x4d0   : > { %v1255_v40 = vpop.permute.xlu1 %1254 }
 0x4d1   : > { %v1260_v43 = vsel %vm927_vm4, %v1255_v40, 0  ;;  %v2270_v40 = vld [vmem:[%s2534_s4 + $0x8] sm:$0xff]  }
 0x4da   : > { %v2287_v38 = vpop.eup %2286 }
 0x4db   : > { %v1142_v39 = vmul.f32 %v2287_v38, %v2281_v21  ;;  %v2289_v42 = vpop.eup %2288  ;;  %v2268_v38 = vld [vmem:[%s2534_s4 + $0x18] sm:$0xff]  }
 0x4dc   : > { %v1252_v44 = vmul.f32 %v2289_v42, %v2279_v16  ;;  %v2045_v42 = vld [vmem:[%s722_s17] ss:$0 sm:$0xff] }
 0x4dd   : > { %v1143_v41 = vpack.c.bf16 %v1142_v39, %v1142_v39  ;;  %v2269_v39 = vld [vmem:[%s2534_s4 + $0x10] sm:$0xff]  }
 0x4de   : > { %v1253_v45 = vpack.c.bf16 %v1252_v44, %v1252_v44 }
 0x4df   : > { %2144 = vmatmul.mubr.msk.bf16.vlgmr.msra.gmra.mxu1 %vm910_vm5, %v1143_v41  ;;  %v2271_v41 = vld [vmem:[%s2534_s4] sm:$0xff]   ;;  %s2830_s4 = sld [smem:[#allocation3_spill]] }
 0x4e0   : > { %2154 = vmatpush3.bf16.msra.mxu1 %v1260_v43  ;;  %2155 = vmatprep.mubr.msk.bf16.mxu1 %vm2356_vm2, %v2355_v27 }
 0x4e1   : > { %2171 = vmatprep.subr.bf16.mxu1 %v2355_v27 }
 0x4e5   : > { %p2058_p8 = scmp.ne.s32.totalorder %s2830_s4, 1 }
 0x4e6   : > { %s2832_s21 = sld [smem:[#allocation15_spill]] (!%p2058_p8) }
 0x4e7   : > { %2156 = vmatmul.mubr.msk.bf16.vlgmr.msra.gmra.mxu1 %vm910_vm5, %v1253_v45  ;;  %s2833_s0 = sld [smem:[#allocation16_spill]] (!%p2058_p8) }
 0x4e8   : > { %2177 = vmatprep.mubr.msk.bf16.mxu1 %vm2356_vm2, %v2355_v27  ;;  %2172 = vmatpush3.bf16.msra.mxu1 %v2263_v23  ;;  %s2834_s29 = sld [smem:[#allocation18_spill]] (!%p2058_p8) }
 0x4e9   : > { %2173 = vmatprep.subr.bf16.mxu1 %v2355_v27 }
 0x56a   : > { %v965_v47 = vpop.f32.mrf.mxu1 }
 0x56c   : > { %v2121_v48 = vpop.f32.mrf.mxu1 }
 0x56e   : > { %v968_v49 = vpop.f32.mrf.mxu1 }
 0x570   : > { %v2122_v50 = vpop.f32.mrf.mxu1 }
 0x572   : > { %v1076_v51 = vpop.f32.mrf.mxu1 }
 0x573   : > { %1303 = vrot.lane.b32.xlu1 %v1076_v51, %s2362_s27 }
 0x574   : > { %v2133_v52 = vpop.f32.mrf.mxu1 }
 0x576   : > { %v1079_v53 = vpop.f32.mrf.mxu1 }
 0x578   : > { %v2134_v54 = vpop.f32.mrf.mxu1 }
 0x59f   : > { %v1186_v58 = vpop.f32.mrf.mxu1 }
 0x5a0   : > { %1307 = vrot.lane.b32.xlu0 %v1186_v58, %s2360_s20 }
 0x5a1   : > { %v2145_v59 = vpop.f32.mrf.mxu1 }
 0x5a3   : > { %v1189_v60 = vpop.f32.mrf.mxu1 }
 0x5a5   : > { %v2146_v61 = vpop.f32.mrf.mxu1 }
 0x5a7   : > { %v1296_v62 = vpop.f32.mrf.mxu1 }
 0x5a8   : > { %1311 = vrot.lane.b32.xlu1 %v1296_v62, %s2359_s18 }
 0x5a9   : > { %v2157_v63 = vpop.f32.mrf.mxu1 }
 0x5ab   : > { %v1299_v0 = vpop.f32.mrf.mxu1 }
 0x5ad   : > { %v2158_v1 = vpop.f32.mrf.mxu1 }
 0x5e5   : > { %v1304_v2 = vpop.permute.xlu1 %1303 }
 0x5e6   : > { %v1314_v5 = vsel %vm863_vm3, %v965_v47, %v1304_v2 }
 0x612   : > { %v1308_v4 = vpop.permute.xlu0 %1307 }
 0x613   : > { %v1316_v6 = vsel %vm1315_vm6, %v1314_v5, %v1308_v4 }
 0x61a   : > { %v1312_v7 = vpop.permute.xlu1 %1311 }
 0x61b   : > { %v1317_v8 = vsel %vm749_vm1, %v1316_v6, %v1312_v7 }
 0x61c   : > { %v1326_v9 = vpack.c.bf16 %v1317_v8, %v1317_v8 }
 0x61e   : > { %2168 = vmatmul.mubr.msk.bf16.vlgmr.msra.gmra.mxu0 %vm1351_vm7, %v1326_v9 }
 0x61f   : > { %2193 = vmatprep.mubr.msk.bf16.mxu0 %vm2356_vm2, %v2355_v27  ;;  %2182 = vmatpush3.bf16.msra.mxu0 %v2266_v25 }
 0x620   : > { %2183 = vmatprep.subr.bf16.mxu0 %v2355_v27 }
 0x623   : > { %2184 = vmatpush3.bf16.msra.mxu0 %v2267_v37 }
 0x624   : > { %2185 = vmatprep.subr.bf16.mxu0 %v2355_v27 }
 0x627   : > { %2186 = vmatpush3.bf16.msra.mxu0 %v2268_v38 }
 0x628   : > { %2187 = vmatprep.subr.bf16.mxu0 %v2355_v27 }
 0x62b   : > { %2188 = vmatpush3.bf16.msra.mxu0 %v2269_v39 }
 0x62c   : > { %2189 = vmatprep.subr.bf16.mxu0 %v2355_v27 }
 0x62f   : > { %2190 = vmatpush3.bf16.msra.mxu0 %v2270_v40 }
 0x630   : > { %2191 = vmatprep.subr.bf16.mxu0 %v2355_v27 }
 0x633   : > { %2192 = vmatpush3.bf16.msra.mxu0 %v2271_v41 }
 0x6de   : > { %v1389_v10 = vpop.f32.mrf.mxu0 }
 0x6df   : > { %v1395_v12 = vadd.f32 %v1389_v10, %v2554_v3  ;;  %v2264_v3 = vld [vmem:[%s2543_s5 + $0x8] sm:$0xff]  }
 0x6e0   : > { %v2169_v13 = vpop.f32.mrf.mxu0  ;;  %2174 = vmatpush3.bf16.msra.mxu1 %v2264_v3 }
 0x6e1   : > { %v1403_v14 = vadd.f32 %v2042_v11, %v1395_v12  ;;  %2175 = vmatprep.subr.bf16.mxu1 %v2355_v27  ;;  %v2057_v27 = vld [vmem:[%s730_s1] ss:$0 sm:$0xff]  ;;  %s2831_s1 = sld [smem:[#allocation17_spill]] (!%p2058_p8) }
 0x6e2   : > { %v1392_v15 = vpop.f32.mrf.mxu0 }
 0x6e3   : > { %v1406_v16 = vsel %vm749_vm1, %v1403_v14, 0.0 }
 0x6e4   : > { %1407 = vadd.xlane.f32.xlu0 %v1406_v16  ;;  %v2170_v17 = vpop.f32.mrf.mxu0  ;;  %2176 = vmatpush3.bf16.msra.mxu1 %v2265_v24 }
 0x76d   : > { %v1408_v18 = vpop.xlane.xlu0 %1407 }
 0x76e   : > { %v1409_v19 = vmul.f32 0.020833334, %v1408_v18 }
 0x770   : > { %v1410_v20 = vsub.f32 %v1403_v14, %v1409_v19 }
 0x772   : > { %v1411_v21 = vmul.f32 %v1410_v20, %v1410_v20 }
 0x774   : > { %v1412_v22 = vsel %vm749_vm1, %v1411_v21, 0.0 }
 0x775   : > { %1413 = vadd.xlane.f32.xlu1 %v1412_v22 }
 0x7fe   : > { %v1414_v26 = vpop.xlane.xlu1 %1413 }
 0x7ff   : > { %v1415_v28 = vmul.f32 0.020833334, %v1414_v26 }
 0x801   : > { %v1416_v29 = vadd.f32 1e-05, %v1415_v28 }
 0x803   : > { %2290 = vrsqrt.f32 %v1416_v29 }
 0x810   : > { %v2291_v30 = vpop.eup %2290 }
 0x811   : > { %v1418_v32 = vmul.f32 %v2291_v30, %v1410_v20 }
 0x813   : > { %v1425_v34 = vmul.f32 %v2043_v31, %v1418_v32 }
 0x815   : > { %v1432_v35 = vadd.f32 %v2044_v33, %v1425_v34 }
 0x817   : > { %v1439_v36 = vpack.c.bf16 %v1432_v35, %v1432_v35 }
 0x819   : > { %2178 = vmatmul.mubr.msk.bf16.vlgmr.msra.gmra.mxu1 %vm749_vm1, %v1439_v36 }
 0x8d9   : > { %v1502_v43 = vpop.f32.mrf.mxu1 }
 0x8da   : > { %v1503_v44 = vadd.f32 %v2045_v42, %v1502_v43 }
 0x8db   : > { %v2179_v45 = vpop.f32.mrf.mxu1 }
 0x8dc   : > { %2292 = vtanh.f32 %v1503_v44 }
 0x8dd   : > { %v1505_v46 = vpop.f32.mrf.mxu1 }
 0x8df   : > { %v2180_v47 = vpop.f32.mrf.mxu1 }
 0x8e9   : > { %v2293_v48 = vpop.eup %2292 }
 0x8ea   : > { %v1521_v49 = vpack.c.bf16 %v2293_v48, %v2293_v48 }
 0x8ec   : > { %2194 = vmatmul.mubr.msk.bf16.vlgmr.msra.gmra.mxu0 %vm1558_vm8, %v1521_v49 }
 0x9ac   : > { %v1596_v50 = vpop.f32.mrf.mxu0 }
 0x9ad   : > { %v1602_v51 = vadd.f32 %v1596_v50, %v1403_v14 }
 0x9ae   : > { %v2195_v52 = vpop.f32.mrf.mxu0  ;;  %1615 = sbr.rel (%p2058_p8) target bundleno = 2992 (0xbb0), region = 96 }
 0x9af   : > { %v1610_v53 = vadd.f32 %v2057_v27, %v1602_v51 }
 0x9b0   : > { %v1599_v54 = vpop.f32.mrf.mxu0 }
 0x9b1   : > { %1611 = vst.msk [vmem:[#allocation2] sm:$0xff] %vm749_vm1, %v1610_v53 }
 0x9b2   : > { %v2196_v55 = vpop.f32.mrf.mxu0 }
 0x9b3   : > { %v1618_v56 = vsel %vm749_vm1, %v1610_v53, 0.0  ;;  %v2294_v62 = vld [vmem:[%s2831_s1 + $0x44] ss:$16 sps:$4 sm:$0xff]   ;;  %v2296_v63 = vld [vmem:[%s2831_s1 + $0x4c] ss:$16 sps:$4 sm:$0xff]   ;;  %v2364_v9 = vmov 0   ;;  %v1660_v22 = vlaneseq }
 0x9b4   : > { %1619 = vadd.xlane.f32.xlu0 %v1618_v56  ;;  %v2298_v0 = vld [vmem:[%s2831_s1 + $0x40] ss:$16 sps:$4 sm:$0xff]   ;;  %v2299_v1 = vld [vmem:[%s2831_s1 + $0x48] ss:$16 sps:$4 sm:$0xff]   ;;  %v2300_v2 = vld [vmem:[%s2831_s1 + $0x24] ss:$16 sps:$4 sm:$0xff]   ;;  %1753 = vmatprep.subr.bf16.mxu0 %v2294_v62 }
 0x9b5   : > { %v2302_v4 = vld [vmem:[%s2831_s1 + $0x2c] ss:$16 sps:$4 sm:$0xff]   ;;  %1794 = vmatprep.subr.bf16.mxu1 %v2296_v63  ;;  %1754 = vmatpush1.bf16.msra.mxu0 %v2298_v0  ;;  %v2304_v5 = vld [vmem:[%s2831_s1 + $0x20] ss:$16 sps:$4 sm:$0xff]   ;;  %v2305_v6 = vld [vmem:[%s2831_s1 + $0x28] ss:$16 sps:$4 sm:$0xff]  }
 0x9b6   : > { %1795 = vmatpush1.bf16.msra.mxu1 %v2299_v1  ;;  %1755 = vmatprep.subr.bf16.mxu0 %v2300_v2  ;;  %v2306_v7 = vld [vmem:[%s2831_s1 + $0x4] ss:$16 sps:$4 sm:$0xff]   ;;  %v2308_v8 = vld [vmem:[%s2831_s1 + $0xc] ss:$16 sps:$4 sm:$0xff]   ;;  %v2310_v10 = vld [vmem:[%s2831_s1] ss:$16 sps:$4 sm:$0xff]  }
 0x9b7   : > { %1796 = vmatprep.subr.bf16.mxu1 %v2302_v4  ;;  %1775 = vmatprep.mubr.bf16.mxu0 %v2364_v9  ;;  %v2311_v11 = vld [vmem:[%s2831_s1 + $0x8] ss:$16 sps:$4 sm:$0xff]   ;;  %v2059_v16 = vld [vmem:[%s2832_s21] ss:$0 sm:$0xff]  ;;  %v1661_v23 = vshrl.u32 %v1660_v22, 7 }
 0x9b8   : > { %1816 = vmatprep.mubr.bf16.mxu1 %v2364_v9  ;;  %v2060_v18 = vld [vmem:[%s2833_s0] ss:$0 sm:$0xff] }
 0x9b9   : > { %1756 = vmatpush1.bf16.msra.mxu0 %v2304_v5  ;;  %v1662_v3 = vsub.s32 0, %v1661_v23  ;;  %v1670_v24 = vsub.s32 2, %v1661_v23  ;;  %v1658_v25 = vld [vmem:[%s2834_s29] sm:$0xf]  ;;  %v1666_v26 = vsub.s32 1, %v1661_v23  ;;  %v1674_v28 = vsub.s32 3, %v1661_v23 }
 0x9ba   : > { %1797 = vmatpush1.bf16.msra.mxu1 %v2305_v6  ;;  %1757 = vmatprep.subr.bf16.mxu0 %v2306_v7 }
 0x9bb   : > { %1798 = vmatprep.subr.bf16.mxu1 %v2308_v8  ;;  %v1663_v29 = vrot.slane %v1658_v25, %v1662_v3  ;;  %v1671_v30 = vrot.slane %v1658_v25, %v1670_v24  ;;  %v1667_v31 = vrot.slane %v1658_v25, %v1666_v26  ;;  %v1675_v32 = vrot.slane %v1658_v25, %v1674_v28 }
 0x9bd   : > { %1758 = vmatpush1.bf16.msra.mxu0 %v2310_v10 }
 0x9be   : > { %1799 = vmatpush1.bf16.msra.mxu1 %v2311_v11 }
 0xa3d   : > { %v1620_v57 = vpop.xlane.xlu0 %1619 }
 0xa3e   : > { %v1621_v58 = vmul.f32 0.020833334, %v1620_v57 }
 0xa40   : > { %v1622_v59 = vsub.f32 %v1610_v53, %v1621_v58 }
 0xa42   : > { %v1623_v60 = vmul.f32 %v1622_v59, %v1622_v59 }
 0xa44   : > { %v1624_v61 = vsel %vm749_vm1, %v1623_v60, 0.0 }
 0xa45   : > { %1625 = vadd.xlane.f32.xlu0 %v1624_v61 }
 0xace   : > { %v1626_v12 = vpop.xlane.xlu0 %1625 }
 0xacf   : > { %v1627_v13 = vmul.f32 0.020833334, %v1626_v12 }
 0xad1   : > { %v1628_v14 = vadd.f32 1e-05, %v1627_v13 }
 0xad3   : > { %2312 = vrsqrt.f32 %v1628_v14 }
 0xae0   : > { %v2313_v15 = vpop.eup %2312 }
 0xae1   : > { %v1630_v17 = vmul.f32 %v2313_v15, %v1622_v59 }
 0xae3   : > { %v1637_v19 = vmul.f32 %v2059_v16, %v1630_v17 }
 0xae5   : > { %v1644_v20 = vadd.f32 %v2060_v18, %v1637_v19 }
 0xae7   : > { %v1657_v21 = vpack.c.bf16 %v1644_v20, %v1644_v20 }
 0xae9   : > { %2073 = vmatmul.mubr.msk.bf16.vlgmr.msra.gmra.mxu0 %vm749_vm1, %v1657_v21  ;;  %2074 = vmatmul.mubr.msk.bf16.vlgmr.msra.gmra.mxu1 %vm749_vm1, %v1657_v21 }
 0xba9   : > { %v1777_v33 = vpop.f32.mrf.mxu0  ;;  %v1818_v34 = vpop.f32.mrf.mxu1 }
 0xbaa   : > { %v1778_v35 = vadd.f32 %v1777_v33, %v1663_v29  ;;  %v1819_v36 = vadd.f32 %v1818_v34, %v1671_v30 }
 0xbab   : > { %v1779_v37 = vpop.f32.mrf.mxu0  ;;  %v1820_v38 = vpop.f32.mrf.mxu1 }
 0xbac   : > { %1825 = vst [vmem:[%s2548_s8] sm:$0xff] %v1778_v35  ;;  %1827 = vst [vmem:[%s2548_s8 + $0x10] sm:$0xff] %v1819_v36  ;;  %v1780_v39 = vadd.f32 %v1779_v37, %v1667_v31  ;;  %v1821_v40 = vadd.f32 %v1820_v38, %v1675_v32 }
 0xbad   : > { %v1781_v41 = vpop.f32.mrf.mxu0  ;;  %v1822_v42 = vpop.f32.mrf.mxu1 }
 0xbae   : > { %1826 = vst [vmem:[%s2548_s8 + $0x8] sm:$0xff] %v1780_v39  ;;  %1828 = vst [vmem:[%s2548_s8 + $0x18] sm:$0xff] %v1821_v40 }
 0xbaf   : > { %v1782_v43 = vpop.f32.mrf.mxu0  ;;  %v1823_v44 = vpop.f32.mrf.mxu1 }
 0xbb0 PF: > { %s2835_s15 = sld [smem:[#allocation6_spill]] }
 0xbb1   : > { %s2836_s24 = sld [smem:[#allocation4_spill]] }
 0xbb2   : > { %s2837_s25 = sld [smem:[#allocation5_spill]] }
 0xbb3   : > { %s2838_s26 = sld [smem:[#allocation7_spill]] }
 0xbb4   : > { %s2839_s27 = sld [smem:[#allocation8_spill]] }
 0xbb6   : > { %s27_s28 = sadd.s32 1, %s2835_s15  }
 0xbb7   : > { %p24_p9 = scmp.ge.s32.totalorder %s27_s28, 6  }
 0xbb9   :  { %26 = sbr.rel (!%p24_p9) target bundleno = 12 (0xc), region = 159 }

</bundles_post_ra>
